<compile_context>
chip_gen: v6e
topology: v6e:2x2x1
jax: 0.10.0
libtpu: 0.0.40
codegen_flags: <defaults>
</compile_context>

<pallas_src>
import functools

import jax
import jax.numpy as jnp
from jax.experimental import pallas as pl
from jax.experimental.pallas import tpu as pltpu


def _pick_tile(n, preferred=(512, 256, 128, 64, 32, 16, 8)):
    """Largest preferred tile (multiple of 8) dividing n, else n itself."""
    for t in preferred:
        if n % t == 0:
            return t
    return n


# ---------------------------------------------------------------------------
# Kernel 1: token-parallel projection GEMM   y = x @ w + b
# ---------------------------------------------------------------------------
def _proj_kernel(x_ref, w_ref, b_ref, y_ref):
    acc = jnp.dot(x_ref[...], w_ref[...], preferred_element_type=jnp.float32)
    y_ref[...] = (acc + b_ref[...]).astype(y_ref.dtype)


def _project(x_flat, w, b, *, tile_m):
    M, D = x_flat.shape
    N = w.shape[1]
    return pl.pallas_call(
        _proj_kernel,
        out_shape=jax.ShapeDtypeStruct((M, N), w.dtype),
        grid_spec=pltpu.PrefetchScalarGridSpec(
            num_scalar_prefetch=0,
            grid=(M // tile_m,),
            in_specs=[
                pl.BlockSpec((tile_m, D), lambda i: (i, 0)),
                pl.BlockSpec((D, N), lambda i: (0, 0)),   # grid-invariant weight
                pl.BlockSpec((1, N), lambda i: (0, 0)),   # grid-invariant bias
            ],
            out_specs=pl.BlockSpec((tile_m, N), lambda i: (i, 0)),
        ),
        compiler_params=pltpu.CompilerParams(
            dimension_semantics=("parallel",)),
    )(x_flat, w, b)


# ---------------------------------------------------------------------------
# Kernel 2: attention + output projection + residual + LayerNorm
#           grid = (B, Lq_tiles, H); H is the (arbitrary) accumulation axis.
# ---------------------------------------------------------------------------
def _attn_kernel(q_ref, k_ref, v_ref, res_ref, wfc_ref, bfc_ref,
                 gamma_ref, beta_ref, out_ref, attn_ref, acc_ref,
                 *, scale, eps):
    h = pl.program_id(2)

    @pl.when(h == 0)
    def _():
        acc_ref[...] = jnp.zeros_like(acc_ref)

    qh = q_ref[0, 0]            # (tq, dk)  compute dtype (bf16)
    kh = k_ref[0, 0]            # (Lk, dk)
    vh = v_ref[0, 0]            # (Lk, dv)

    # scaled dot-product attention (no mask in this instantiation)
    # TODO(synk): mask support would be an extra (tq, Lk) operand applied here.
    s = jax.lax.dot_general(qh, kh, (((1,), (1,)), ((), ())),
                            preferred_element_type=jnp.float32) * scale
    s = s - jnp.max(s, axis=-1, keepdims=True)
    e = jnp.exp(s)
    a = e * pl.reciprocal(jnp.sum(e, axis=-1, keepdims=True), approx=True)
    attn_ref[0, 0] = a.astype(attn_ref.dtype)

    o = jnp.dot(a.astype(vh.dtype), vh, preferred_element_type=jnp.float32)
    # concat-over-heads followed by fc == sum over heads of per-head matmuls
    acc_ref[...] += jnp.dot(o.astype(wfc_ref.dtype), wfc_ref[...],
                            preferred_element_type=jnp.float32)

    @pl.when(h == pl.num_programs(2) - 1)
    def _():
        x = acc_ref[...] + bfc_ref[...] + res_ref[0].astype(jnp.float32)
        inv_d = 1.0 / x.shape[-1]
        mean = jnp.sum(x, axis=-1, keepdims=True) * inv_d
        xc = x - mean
        var = jnp.sum(xc * xc, axis=-1, keepdims=True) * inv_d
        y = xc * jax.lax.rsqrt(var + eps)
        out_ref[0] = (y * gamma_ref[...] + beta_ref[...]).astype(out_ref.dtype)


def multi_head_attention(q, k, v, params, *, num_heads, d_k, d_v, eps=1e-6,
                         compute_dtype=jnp.bfloat16,
                         attn_dtype=jnp.bfloat16):
    """q, k, v: (B, L, d_model). Returns (out (B, Lq, d_model), attn (B, H, Lq, Lk))."""
    wq, bq, wfc, bfc, gamma, beta = params
    B, Lq, D = q.shape
    Lk = k.shape[1]
    H = num_heads
    # The reference forward applies `embed_qs` to q, k and v, so the value
    # width must match the key width.
    assert d_v == d_k, "reference forward uses embed_qs for v; requires d_v == d_k"
    assert d_v % 8 == 0 or H == 1, "per-head fc slice needs d_v % 8 == 0"

    # MXU operands in bf16 (f32 accumulation); biases / LayerNorm params in f32.
    wq_c = wq.astype(compute_dtype)
    wfc_c = wfc.astype(compute_dtype)
    bq2 = bq.reshape(1, -1).astype(jnp.float32)
    bfc2 = bfc.reshape(1, -1).astype(jnp.float32)
    gamma2 = gamma.reshape(1, -1).astype(jnp.float32)
    beta2 = beta.reshape(1, -1).astype(jnp.float32)

    # ---- stage 1: Q/K/V projections over the flattened (B*L, D) tokens ------
    def proj(x):
        xf = x.reshape(-1, D).astype(compute_dtype)
        return _project(xf, wq_c, bq2, tile_m=_pick_tile(xf.shape[0]))

    qp = proj(q)
    kp = qp if k is q else proj(k)
    vp = kp if v is k else (qp if v is q else proj(v))   # reuse aliased inputs

    # split heads: (B*L, H*dk) -> (B, H, L, dk)  (layout plumbing in XLA)
    def split_heads(p, L):
        return p.reshape(B, L, H, d_k).transpose(0, 2, 1, 3)

    qh = split_heads(qp, Lq)
    kh = split_heads(kp, Lk)
    vh = split_heads(vp, Lk)

    # ---- stage 2: attention + fc + residual + LayerNorm ----------------------
    tq = _pick_tile(Lq, preferred=(256, 128, 64, 32, 16, 8))
    n_qt = Lq // tq

    kernel = functools.partial(_attn_kernel, scale=float(d_k) ** -0.5, eps=eps)

    out, attn = pl.pallas_call(
        kernel,
        out_shape=(jax.ShapeDtypeStruct((B, Lq, D), q.dtype),
                   jax.ShapeDtypeStruct((B, H, Lq, Lk), attn_dtype)),
        grid_spec=pltpu.PrefetchScalarGridSpec(
            num_scalar_prefetch=0,
            grid=(B, n_qt, H),
            in_specs=[
                pl.BlockSpec((1, 1, tq, d_k), lambda b, qi, h: (b, h, qi, 0)),
                pl.BlockSpec((1, 1, Lk, d_k), lambda b, qi, h: (b, h, 0, 0)),
                pl.BlockSpec((1, 1, Lk, d_v), lambda b, qi, h: (b, h, 0, 0)),
                pl.BlockSpec((1, tq, D), lambda b, qi, h: (b, qi, 0)),   # residual
                pl.BlockSpec((d_v, D), lambda b, qi, h: (h, 0)),         # fc slice
                pl.BlockSpec((1, D), lambda b, qi, h: (0, 0)),           # fc bias
                pl.BlockSpec((1, D), lambda b, qi, h: (0, 0)),           # gamma
                pl.BlockSpec((1, D), lambda b, qi, h: (0, 0)),           # beta
            ],
            out_specs=[
                pl.BlockSpec((1, tq, D), lambda b, qi, h: (b, qi, 0)),
                pl.BlockSpec((1, 1, tq, Lk), lambda b, qi, h: (b, h, qi, 0)),
            ],
            scratch_shapes=[pltpu.VMEM((tq, D), jnp.float32)],
        ),
        compiler_params=pltpu.CompilerParams(
            dimension_semantics=("parallel", "parallel", "arbitrary")),
    )(qh, kh, vh, q, wfc_c, bfc2, gamma2, beta2)
    return out, attn


def _reference(q, k, v, params, *, num_heads, d_k, d_v, eps=1e-6):
    """Pure-JAX (f32) reference mirroring the PyTorch forward (eval mode)."""
    wq, bq, wfc, bfc, gamma, beta = params
    B, Lq, D = q.shape
    Lk = k.shape[1]
    residual = q
    Q = (q @ wq + bq).reshape(B, Lq, num_heads, d_k).transpose(0, 2, 1, 3)
    K = (k @ wq + bq).reshape(B, Lk, num_heads, d_k).transpose(0, 2, 1, 3)
    V = (v @ wq + bq).reshape(B, Lk, num_heads, d_v).transpose(0, 2, 1, 3)
    attn = jnp.einsum("bhqd,bhkd->bhqk", Q * (d_k ** -0.5), K)
    attn = jax.nn.softmax(attn, axis=-1)
    o = jnp.einsum("bhqk,bhkd->bhqd", attn, V)
    o = o.transpose(0, 2, 1, 3).reshape(B, Lq, num_heads * d_v)
    o = o @ wfc + bfc
    x = residual + o
    mean = jnp.mean(x, axis=-1, keepdims=True)
    var = jnp.mean((x - mean) ** 2, axis=-1, keepdims=True)
    y = (x - mean) / jnp.sqrt(var + eps) * gamma + beta
    return y, attn


if __name__ == "__main__":
    # Small, deterministic configuration.
    B, L, d_model = 2, 8, 32
    num_heads, d_k, d_v = 4, 8, 8   # d_v == d_k (required by reference forward)

    key = jax.random.PRNGKey(0)
    kq, kk, kv, k1, k2, k3, k4 = jax.random.split(key, 7)

    q = jax.random.normal(kq, (B, L, d_model), dtype=jnp.float32)
    k = jax.random.normal(kk, (B, L, d_model), dtype=jnp.float32)
    v = jax.random.normal(kv, (B, L, d_model), dtype=jnp.float32)

    # Deterministic parameter init (shapes from nn.Linear / nn.LayerNorm).
    wq = 0.1 * jax.random.normal(k1, (d_model, num_heads * d_k), dtype=jnp.float32)
    bq = 0.1 * jax.random.normal(k2, (num_heads * d_k,), dtype=jnp.float32)
    wfc = 0.1 * jax.random.normal(k3, (num_heads * d_v, d_model), dtype=jnp.float32)
    bfc = 0.1 * jax.random.normal(k4, (d_model,), dtype=jnp.float32)
    gamma = jnp.ones((d_model,), dtype=jnp.float32)
    beta = jnp.zeros((d_model,), dtype=jnp.float32)
    params = (wq, bq, wfc, bfc, gamma, beta)

    out, attn = multi_head_attention(q, k, v, params,
                                     num_heads=num_heads, d_k=d_k, d_v=d_v)
    jax.block_until_ready((out, attn))

    ref_out, ref_attn = _reference(q, k, v, params,
                                   num_heads=num_heads, d_k=d_k, d_v=d_v)
    # bf16 MXU operands + approx softmax reciprocal -> loose but meaningful tols
    err_out = float(jnp.max(jnp.abs(out - ref_out)))
    err_attn = float(jnp.max(jnp.abs(attn.astype(jnp.float32) - ref_attn)))
    assert jnp.allclose(out, ref_out, atol=5e-2, rtol=5e-2), err_out
    assert jnp.allclose(attn.astype(jnp.float32), ref_attn, atol=2e-2), err_attn

    print("KERNEL_OK")
</pallas_src>

<mosaic_0001>
module attributes {stable_mosaic.version = 11 : i64} {
  func.func @_proj_kernel(%arg0: i32, %arg1: memref<16x32xbf16, #tpu.memory_space<vmem>>, %arg2: memref<32x32xbf16, #tpu.memory_space<vmem>>, %arg3: memref<1x32xf32, #tpu.memory_space<vmem>>, %arg4: memref<16x32xbf16, #tpu.memory_space<vmem>>) attributes {dimension_semantics = [#tpu.dimension_semantics<parallel>], iteration_bounds = array<i64: 1>, scalar_prefetch = 0 : i64, scratch_operands = 0 : i64, tpu.core_type = #tpu.core_type<tc>, window_params = [{transform_indices = @transform_0, window_bounds = array<i64: 16, 32>}, {pipeline_mode = #tpu.pipeline_mode<synchronous>, transform_indices = @transform_1, window_bounds = array<i64: 32, 32>}, {pipeline_mode = #tpu.pipeline_mode<synchronous>, transform_indices = @transform_2, window_bounds = array<i64: 1, 32>}, {transform_indices = @transform_3, window_bounds = array<i64: 16, 32>}]} {
    %c0 = arith.constant 0 : index
    %c0_0 = arith.constant 0 : index
    %0 = vector.load %arg1[%c0, %c0_0] : memref<16x32xbf16, #tpu.memory_space<vmem>>, vector<16x32xbf16>
    %c0_1 = arith.constant 0 : index
    %c0_2 = arith.constant 0 : index
    %1 = vector.load %arg2[%c0_1, %c0_2] : memref<32x32xbf16, #tpu.memory_space<vmem>>, vector<32x32xbf16>
    %cst = arith.constant dense<0.000000e+00> : vector<16x32xf32>
    %2 = tpu.matmul %0, %1, %cst {dimension_numbers = #tpu.dot_dimension_numbers<[1], [0], [0], [1], [0, 0, 1, 1], [], []>} : vector<16x32xbf16>, vector<32x32xbf16>, vector<16x32xf32> -> vector<16x32xf32>
    %c0_3 = arith.constant 0 : index
    %c0_4 = arith.constant 0 : index
    %3 = vector.load %arg3[%c0_3, %c0_4] : memref<1x32xf32, #tpu.memory_space<vmem>>, vector<1x32xf32>
    %4 = vector.broadcast %3 : vector<1x32xf32> to vector<16x32xf32>
    %5 = arith.addf %2, %4 : vector<16x32xf32>
    %6 = arith.truncf %5 : vector<16x32xf32> to vector<16x32xbf16>
    %c0_5 = arith.constant 0 : index
    %c0_6 = arith.constant 0 : index
    %7 = vector.load %arg4[%c0_5, %c0_6] : memref<16x32xbf16, #tpu.memory_space<vmem>>, vector<16x32xbf16>
    tpu.vector_store %arg4[%c0_5, %c0_6], %6 {strides = array<i32>} : memref<16x32xbf16, #tpu.memory_space<vmem>>, vector<16x32xbf16>,
    return
  }
  func.func @transform_0(%arg0: i32) -> (i32, i32) {
    %c0_i32 = arith.constant 0 : i32
    %c0_i32_0 = arith.constant 0 : i32
    return %arg0, %c0_i32 : i32, i32
  }
  func.func @transform_1(%arg0: i32) -> (i32, i32) {
    %c0_i32 = arith.constant 0 : i32
    %c0_i32_0 = arith.constant 0 : i32
    %c0_i32_1 = arith.constant 0 : i32
    return %c0_i32, %c0_i32_0 : i32, i32
  }
  func.func @transform_2(%arg0: i32) -> (i32, i32) {
    %c0_i32 = arith.constant 0 : i32
    %c0_i32_0 = arith.constant 0 : i32
    %c0_i32_1 = arith.constant 0 : i32
    return %c0_i32, %c0_i32_0 : i32, i32
  }
  func.func @transform_3(%arg0: i32) -> (i32, i32) {
    %c0_i32 = arith.constant 0 : i32
    %c0_i32_0 = arith.constant 0 : i32
    return %arg0, %c0_i32 : i32, i32
  }
}

</mosaic_0001>

<bundles_post_ra>
// kernel: tpu_custom_call.1
= control target key start
LH: loop header
LB: loop body
LE: loop exit
PB: predicated region body
PF: predicated region fallthrough
CT: control target
= control target key end

     0   :  { %8 = vsyncpa [#allocation3], 0  ;;  %s292_s0 = inlined_call_operand.hbm [shape: bf16[16,32], index: 0, kind: input, shape index: {}]   ;;  %s293_s1 = inlined_call_operand.hbm [shape: bf16[32,32], index: 1, kind: input, shape index: {}]   ;;  %s294_s2 = inlined_call_operand.vmem [shape: f32[1,32], index: 2, kind: input, shape index: {}]   ;;  %s295_s3 = inlined_call_operand.hbm [shape: bf16[16,32], index: 3, kind: output, shape index: {}]  }
   0x1   :  { %9 = vsyncpa [#allocation6], 0 }
   0x2   :  { %10 = vsyncpa [#allocation4], 0  ;;  %s244_s12 = smov [#allocation2]  }
   0x3   :  { %s16_s13 = sshll.u32 %s244_s12, 4  ;;  %s17_s13 = int_to_ptr.vmem [resolvable:$true] %s16_s13 }
   0x4   :  { %s186_s14 = scalar_lea.vmem %s17_s13, 128  ;;  %p191_p1 = scmp.lt.s32.totalorder %s17_s13, %s17_s13 }
   0x5   :  { %p187_p0 = scmp.ne.s32.totalorder %s17_s13, %s186_s14  ;;  %p192_p2 = scmp.lt.s32.totalorder %s186_s14, %s186_s14 }
   0x7   :  { %p193_p3 = por %p192_p2, %p191_p1 }
   0x9   :  { %p194_p4 = pnand %p193_p3, %p187_p0 }
   0xb   :  { %197 = shalt.err (!%p194_p4)
}
   0xc   :  { %s245_s15 = smov 64   ;;  %s246_s16 = smov 4  }
   0xd   :  { %22 = dma.hbm_to_vmem [thread:$0]  %s292_s0, 128, %s17_s13, [#allocation3], %s245_s15, %s245_s15, %s246_s16  }
   0xe   :  { %s247_s19 = smov [#allocation5]  }
   0xf   :  { %s28_s20 = sshll.u32 %s247_s19, 4  ;;  %s29_s20 = int_to_ptr.vmem [resolvable:$true] %s28_s20 }
  0x10   :  { %s206_s21 = scalar_lea.vmem %s29_s20, 256  ;;  %p211_p6 = scmp.lt.s32.totalorder %s29_s20, %s29_s20 }
  0x11   :  { %p207_p5 = scmp.ne.s32.totalorder %s29_s20, %s206_s21  ;;  %p212_p7 = scmp.lt.s32.totalorder %s206_s21, %s206_s21 }
  0x13   :  { %p213_p8 = por %p212_p7, %p211_p6 }
  0x15   :  { %p214_p9 = pnand %p213_p8, %p207_p5 }
  0x17   :  { %217 = shalt.err (!%p214_p9)
}
  0x18   :  { %34 = dma.hbm_to_vmem [thread:$0]  %s293_s1, 256, %s29_s20, [#allocation6], %s245_s15, %s245_s15, %s246_s16  }
  0x19   :  { %238 = dma.done.wait [#allocation3], 128  }
  0x1a   :  { %239 = vsyncadd [#allocation3], 4294967168 }
  0x1b   :  { %240 = dma.done.wait [#allocation6], 256  }
  0x1c   :  { %241 = vsyncadd [#allocation6], 4294967040  ;;  %v248_v0 = vmov 0.0   ;;  %vm249_vm0 = vmmov 0   ;;  %v175_v1 = vld [vmem:[#allocation5 + $0x8] sm:$0xff]   ;;  %v176_v2 = vld [vmem:[#allocation5] sm:$0xff]  }
  0x1d   :  { %160 = vmatprep.subr.bf16.mxu0 %v248_v0  ;;  %164 = vmatprep.mubr.msk.bf16.mxu0 %vm249_vm0, %v248_v0  ;;  %v177_v3 = vld [vmem:[#allocation2] sm:$0xff]   ;;  %vm74_vm1 = vcmask 261120   ;;  %vm127_vm2 = vcmask 257024   ;;  %s250_s1 = smov [#allocation7]  }
  0x1e   :  { %161 = vmatpush3.bf16.msra.mxu0 %v175_v1  ;;  %v148_v4 = vld [vmem:[%s294_s2] ss:$0 sm:$0xff]  ;;  %s135_s25 = sshll.u32 %s250_s1, 4  ;;  %s136_s25 = int_to_ptr.vmem [resolvable:$true] %s135_s25 }
  0x1f   :  { %162 = vmatprep.subr.bf16.mxu0 %v248_v0  ;;  %s218_s26 = scalar_lea.vmem %s136_s25, 128  ;;  %p223_p11 = scmp.lt.s32.totalorder %s136_s25, %s136_s25 }
  0x20   :  { %p219_p10 = scmp.ne.s32.totalorder %s136_s25, %s218_s26  ;;  %p224_p12 = scmp.lt.s32.totalorder %s218_s26, %s218_s26 }
  0x22   :  { %163 = vmatpush3.bf16.msra.mxu0 %v176_v2  ;;  %p225_p13 = por %p224_p12, %p223_p11 }
  0x24   :  { %p226_p0 = pnand %p225_p13, %p219_p10 }
  0x25   :  { %165 = vmatmul.mubr.msk.bf16.vlgmr.msra.gmra.mxu0 %vm74_vm1, %v177_v3 }
  0xe5   :  { %v112_v5 = vpop.f32.mrf.mxu0 }
  0xe6   :  { %v113_v6 = vadd.f32 %v148_v4, %v112_v5 }
  0xe7   :  { %v166_v7 = vpop.f32.mrf.mxu0 }
  0xe8   :  { %v155_v8 = vpack.c.bf16 %v113_v6, %v113_v6 }
  0xe9   :  { %v115_v9 = vpop.f32.mrf.mxu0 }
  0xea   :  { %v116_v10 = vadd.f32 %v148_v4, %v115_v9  ;;  %128 = vst.msk [vmem:[#allocation7] sm:$0xf] %vm127_vm2, %v155_v8 }
  0xeb   :  { %v167_v11 = vpop.f32.mrf.mxu0 }
  0xec   :  { %v156_v12 = vpack.c.bf16 %v116_v10, %v116_v10 }
  0xee   :  { %129 = vst.msk [vmem:[#allocation7 + $0x4] sm:$0xf] %vm127_vm2, %v156_v12 }
  0xef   :  { %229 = shalt.err (!%p226_p0)
}
  0xf0   :  { %141 = dma.vmem_to_hbm [thread:$0]  %s136_s25, 128, %s295_s3, [#allocation4], %s245_s15, %s245_s15, %s246_s16  }
  0xf1   :  { %242 = dma.done.wait [#allocation4], 128  }
  0xf2   :  { %243 = vsyncadd [#allocation4], 4294967168 }
  0xf3   :  { %145 = vsyncpa [#allocation3], 1 }
  0xf4   :  { %146 = vsyncpa [#allocation6], 1 }
  0xf5   :  { %147 = vsyncpa [#allocation4], 1 }

</bundles_post_ra>
